<compile_context>
chip_gen: v6e
topology: v6e:2x2x1
jax: 0.10.0
libtpu: 0.0.40
codegen_flags: <defaults>
</compile_context>

<pallas_src>
import jax
import jax.numpy as jnp
from jax.experimental import pallas as pl
from jax.experimental.pallas import tpu as pltpu

LANE = 128


def transform_mat(R, t):
    """JAX port of the PyTorch transform_mat.
       R: (B,3,3), t: (B,3,1)  ->  (B,4,4) = [[R, t], [0, 1]]"""
    B = R.shape[0]
    top = jnp.concatenate([R, t], axis=2)                          # (B,3,4)
    bottom = jnp.concatenate(
        [jnp.zeros((B, 1, 3), R.dtype), jnp.ones((B, 1, 1), R.dtype)], axis=2
    )                                                              # (B,1,4)
    return jnp.concatenate([top, bottom], axis=1)                  # (B,4,4)


def _camera_kernel(params_ref, pts_ref, out_ref):
    # params_ref: (B, 8) f32 in SMEM: [m00 m01 m02 m10 m11 m12 b0 b1] per batch
    # pts_ref:    (1, 3, TR, 128) channel-major, lane-dense point tile
    # out_ref:    (1, 2, TR, 128) projected image-point tile
    b = pl.program_id(0)

    x = pts_ref[0, 0].astype(jnp.float32)                          # (TR, 128)
    y = pts_ref[0, 1].astype(jnp.float32)
    z = pts_ref[0, 2].astype(jnp.float32)

    m00 = params_ref[b, 0]
    m01 = params_ref[b, 1]
    m02 = params_ref[b, 2]
    m10 = params_ref[b, 3]
    m11 = params_ref[b, 4]
    m12 = params_ref[b, 5]
    b0 = params_ref[b, 6]
    b1 = params_ref[b, 7]

    # out[k, :] = M[k,0]*x + M[k,1]*y + M[k,2]*z + bias[k]   (pure VPU)
    out_ref[0, 0] = (m00 * x + m01 * y + m02 * z + b0).astype(out_ref.dtype)
    out_ref[0, 1] = (m10 * x + m11 * y + m12 * z + b1).astype(out_ref.dtype)


def orthogonal_camera_project(points, camera_transform, camera_mat, center,
                              tile_rows=32):
    """points: (B,N,3); camera_transform: (B,4,4); camera_mat: (B,2,2);
       center: (B,2)  ->  (B,N,2)"""
    B, N, _ = points.shape
    f32 = jnp.float32

    # Fold the two einsums into one (2x3) matrix + bias per batch element.
    M = jnp.einsum('bij,bjk->bik', camera_mat.astype(f32),
                   camera_transform[:, :2, :3].astype(f32))        # (B,2,3)
    bias = (jnp.einsum('bij,bj->bi', camera_mat.astype(f32),
                       camera_transform[:, :2, 3].astype(f32))
            + center.astype(f32))                                  # (B,2)
    params = jnp.concatenate([M.reshape(B, 6), bias], axis=-1)     # (B,8) f32

    # Wrapper-side layout plumbing: channel-major, N folded onto the lane axis.
    n_pad = ((N + LANE - 1) // LANE) * LANE
    pts_cm = jnp.transpose(points, (0, 2, 1))                      # (B,3,N)
    if n_pad != N:
        pts_cm = jnp.pad(pts_cm, ((0, 0), (0, 0), (0, n_pad - N)))
    rows = n_pad // LANE
    pts4 = pts_cm.reshape(B, 3, rows, LANE)                        # (B,3,rows,128)

    tr = min(tile_rows, rows)
    if tr % 8 != 0:
        tr = rows            # full-extent block along 'rows' is always legal
    grid = (B, pl.cdiv(rows, tr))

    out4 = pl.pallas_call(
        _camera_kernel,
        out_shape=jax.ShapeDtypeStruct((B, 2, rows, LANE), points.dtype),
        grid=grid,
        in_specs=[
            pl.BlockSpec(memory_space=pltpu.MemorySpace.SMEM),           # params
            pl.BlockSpec((1, 3, tr, LANE), lambda b, n: (b, 0, n, 0)),   # points
        ],
        out_specs=pl.BlockSpec((1, 2, tr, LANE), lambda b, n: (b, 0, n, 0)),
        compiler_params=pltpu.CompilerParams(
            dimension_semantics=("parallel", "parallel")),
        cost_estimate=pl.CostEstimate(
            flops=12 * B * N,
            transcendentals=0,
            bytes_accessed=(3 + 2) * 4 * B * N + 4 * 8 * B),
    )(params, pts4)

    out_cm = out4.reshape(B, 2, n_pad)[:, :, :N]                   # (B,2,N)
    return jnp.transpose(out_cm, (0, 2, 1))                        # (B,N,2)


class OrthogonalCamera:
    """JAX/Pallas port of the PyTorch OrthogonalCamera module (forward only)."""

    def __init__(self, rotation=None, translation=None, batch_size=1,
                 center=None, dtype=jnp.float32):
        self.batch_size = batch_size
        self.dtype = dtype
        if center is None:
            center = jnp.zeros((batch_size, 2), dtype=dtype)
        self.center = center
        if rotation is None:
            rotation = jnp.tile(jnp.eye(3, dtype=dtype)[None],
                                (batch_size, 1, 1))
        self.rotation = rotation
        if translation is None:
            translation = jnp.zeros((batch_size, 3), dtype=dtype)
        self.translation = translation

    def __call__(self, points):
        camera_mat = jnp.tile(jnp.eye(2, dtype=self.dtype)[None],
                              (self.batch_size, 1, 1))
        camera_transform = transform_mat(self.rotation,
                                         self.translation[..., None])
        return orthogonal_camera_project(points, camera_transform,
                                         camera_mat, self.center)


if __name__ == "__main__":
    key = jax.random.PRNGKey(0)
    kp, kr, kt, kc, kp2 = jax.random.split(key, 5)

    B, N = 2, 2048
    points = jax.random.normal(kp, (B, N, 3), dtype=jnp.float32)
    rotation = (jnp.tile(jnp.eye(3, dtype=jnp.float32)[None], (B, 1, 1))
                + 0.1 * jax.random.normal(kr, (B, 3, 3), dtype=jnp.float32))
    translation = jax.random.normal(kt, (B, 3), dtype=jnp.float32)
    center = jax.random.normal(kc, (B, 2), dtype=jnp.float32)

    cam = OrthogonalCamera(rotation=rotation, translation=translation,
                           batch_size=B, center=center)
    out = jax.block_until_ready(cam(points))

    # Pure-JAX reference mirroring the PyTorch forward exactly.
    def reference(pts):
        T = transform_mat(rotation, translation[..., None])
        ones = jnp.ones(pts.shape[:-1] + (1,), jnp.float32)
        pts_h = jnp.concatenate([pts, ones], axis=-1)
        proj = jnp.einsum('bki,bji->bjk', T, pts_h)
        cm = jnp.tile(jnp.eye(2, dtype=jnp.float32)[None], (B, 1, 1))
        return jnp.einsum('bki,bji->bjk', cm, proj[:, :, :2]) + center[:, None, :]

    ref = reference(points)
    assert out.shape == (B, N, 2)
    assert jnp.allclose(out, ref, atol=1e-5, rtol=1e-5), "mismatch vs reference"

    # Multi-tile grid path (grid = (B, 2)).
    T = transform_mat(rotation, translation[..., None])
    cam_eye = jnp.tile(jnp.eye(2, dtype=jnp.float32)[None], (B, 1, 1))
    out_tiled = jax.block_until_ready(
        orthogonal_camera_project(points, T, cam_eye, center, tile_rows=8))
    assert jnp.allclose(out_tiled, ref, atol=1e-5, rtol=1e-5), "tiled mismatch"

    # Ragged N (not a multiple of 128) -> wrapper padding path.
    N2 = 200
    points2 = jax.random.normal(kp2, (B, N2, 3), dtype=jnp.float32)
    out2 = jax.block_until_ready(
        orthogonal_camera_project(points2, T, cam_eye, center))
    ref2 = reference(points2)
    assert out2.shape == (B, N2, 2)
    assert jnp.allclose(out2, ref2, atol=1e-5, rtol=1e-5), "ragged mismatch"

    print("KERNEL_OK")
</pallas_src>

<mosaic_0001>
module attributes {stable_mosaic.version = 11 : i64} {
  func.func @_camera_kernel(%arg0: i32, %arg1: i32, %arg2: memref<2x8xf32, #tpu.memory_space<smem>>, %arg3: memref<1x3x16x128xf32, #tpu.memory_space<vmem>>, %arg4: memref<1x2x16x128xf32, #tpu.memory_space<vmem>>) attributes {dimension_semantics = [#tpu.dimension_semantics<parallel>, #tpu.dimension_semantics<parallel>], iteration_bounds = array<i64: 2, 1>, scalar_prefetch = 0 : i64, scratch_operands = 0 : i64, tpu.core_type = #tpu.core_type<tc>, window_params = [{transform_indices = @transform_0, window_bounds = array<i64: 2, 8>}, {transform_indices = @transform_1, window_bounds = array<i64: 1, 3, 16, 128>}, {transform_indices = @transform_2, window_bounds = array<i64: 1, 2, 16, 128>}]} {
    %c0 = arith.constant 0 : index
    %c0_0 = arith.constant 0 : index
    %c0_1 = arith.constant 0 : index
    %c0_2 = arith.constant 0 : index
    %0 = vector.load %arg3[%c0, %c0_0, %c0_1, %c0_2] : memref<1x3x16x128xf32, #tpu.memory_space<vmem>>, vector<1x1x16x128xf32>
    %1 = vector.shape_cast %0 : vector<1x1x16x128xf32> to vector<16x128xf32>
    %c0_3 = arith.constant 0 : index
    %c1 = arith.constant 1 : index
    %c0_4 = arith.constant 0 : index
    %c0_5 = arith.constant 0 : index
    %2 = vector.load %arg3[%c0_3, %c1, %c0_4, %c0_5] : memref<1x3x16x128xf32, #tpu.memory_space<vmem>>, vector<1x1x16x128xf32>
    %3 = vector.shape_cast %2 : vector<1x1x16x128xf32> to vector<16x128xf32>
    %c0_6 = arith.constant 0 : index
    %c2 = arith.constant 2 : index
    %c0_7 = arith.constant 0 : index
    %c0_8 = arith.constant 0 : index
    %4 = vector.load %arg3[%c0_6, %c2, %c0_7, %c0_8] : memref<1x3x16x128xf32, #tpu.memory_space<vmem>>, vector<1x1x16x128xf32>
    %5 = vector.shape_cast %4 : vector<1x1x16x128xf32> to vector<16x128xf32>
    %6 = arith.index_cast %arg0 : i32 to index
    %c0_9 = arith.constant 0 : index
    %7 = memref.load %arg2[%6, %c0_9] : memref<2x8xf32, #tpu.memory_space<smem>>
    %8 = arith.index_cast %arg0 : i32 to index
    %c1_10 = arith.constant 1 : index
    %9 = memref.load %arg2[%8, %c1_10] : memref<2x8xf32, #tpu.memory_space<smem>>
    %10 = arith.index_cast %arg0 : i32 to index
    %c2_11 = arith.constant 2 : index
    %11 = memref.load %arg2[%10, %c2_11] : memref<2x8xf32, #tpu.memory_space<smem>>
    %12 = arith.index_cast %arg0 : i32 to index
    %c3 = arith.constant 3 : index
    %13 = memref.load %arg2[%12, %c3] : memref<2x8xf32, #tpu.memory_space<smem>>
    %14 = arith.index_cast %arg0 : i32 to index
    %c4 = arith.constant 4 : index
    %15 = memref.load %arg2[%14, %c4] : memref<2x8xf32, #tpu.memory_space<smem>>
    %16 = arith.index_cast %arg0 : i32 to index
    %c5 = arith.constant 5 : index
    %17 = memref.load %arg2[%16, %c5] : memref<2x8xf32, #tpu.memory_space<smem>>
    %18 = arith.index_cast %arg0 : i32 to index
    %c6 = arith.constant 6 : index
    %19 = memref.load %arg2[%18, %c6] : memref<2x8xf32, #tpu.memory_space<smem>>
    %20 = arith.index_cast %arg0 : i32 to index
    %c7 = arith.constant 7 : index
    %21 = memref.load %arg2[%20, %c7] : memref<2x8xf32, #tpu.memory_space<smem>>
    %22 = vector.broadcast %7 : f32 to vector<16x128xf32>
    %23 = arith.mulf %22, %1 : vector<16x128xf32>
    %24 = vector.broadcast %9 : f32 to vector<16x128xf32>
    %25 = arith.mulf %24, %3 : vector<16x128xf32>
    %26 = arith.addf %23, %25 : vector<16x128xf32>
    %27 = vector.broadcast %11 : f32 to vector<16x128xf32>
    %28 = arith.mulf %27, %5 : vector<16x128xf32>
    %29 = arith.addf %26, %28 : vector<16x128xf32>
    %30 = vector.broadcast %19 : f32 to vector<16x128xf32>
    %31 = arith.addf %29, %30 : vector<16x128xf32>
    %c0_12 = arith.constant 0 : index
    %c0_13 = arith.constant 0 : index
    %c0_14 = arith.constant 0 : index
    %c0_15 = arith.constant 0 : index
    %32 = vector.load %arg4[%c0_12, %c0_13, %c0_14, %c0_15] : memref<1x2x16x128xf32, #tpu.memory_space<vmem>>, vector<1x1x16x128xf32>
    %33 = vector.shape_cast %32 : vector<1x1x16x128xf32> to vector<16x128xf32>
    %34 = vector.shape_cast %31 : vector<16x128xf32> to vector<1x1x16x128xf32>
    tpu.vector_store %arg4[%c0_12, %c0_13, %c0_14, %c0_15], %34 {strides = array<i32>} : memref<1x2x16x128xf32, #tpu.memory_space<vmem>>, vector<1x1x16x128xf32>,
    %35 = vector.broadcast %13 : f32 to vector<16x128xf32>
    %36 = arith.mulf %35, %1 : vector<16x128xf32>
    %37 = vector.broadcast %15 : f32 to vector<16x128xf32>
    %38 = arith.mulf %37, %3 : vector<16x128xf32>
    %39 = arith.addf %36, %38 : vector<16x128xf32>
    %40 = vector.broadcast %17 : f32 to vector<16x128xf32>
    %41 = arith.mulf %40, %5 : vector<16x128xf32>
    %42 = arith.addf %39, %41 : vector<16x128xf32>
    %43 = vector.broadcast %21 : f32 to vector<16x128xf32>
    %44 = arith.addf %42, %43 : vector<16x128xf32>
    %c0_16 = arith.constant 0 : index
    %c1_17 = arith.constant 1 : index
    %c0_18 = arith.constant 0 : index
    %c0_19 = arith.constant 0 : index
    %45 = vector.load %arg4[%c0_16, %c1_17, %c0_18, %c0_19] : memref<1x2x16x128xf32, #tpu.memory_space<vmem>>, vector<1x1x16x128xf32>
    %46 = vector.shape_cast %45 : vector<1x1x16x128xf32> to vector<16x128xf32>
    %47 = vector.shape_cast %44 : vector<16x128xf32> to vector<1x1x16x128xf32>
    tpu.vector_store %arg4[%c0_16, %c1_17, %c0_18, %c0_19], %47 {strides = array<i32>} : memref<1x2x16x128xf32, #tpu.memory_space<vmem>>, vector<1x1x16x128xf32>,
    return
  }
  func.func @transform_0(%arg0: i32, %arg1: i32) -> (i32, i32) {
    %c0_i32 = arith.constant 0 : i32
    %c0_i32_0 = arith.constant 0 : i32
    %c0_i32_1 = arith.constant 0 : i32
    return %c0_i32, %c0_i32_0 : i32, i32
  }
  func.func @transform_1(%arg0: i32, %arg1: i32) -> (i32, i32, i32, i32) {
    %c0_i32 = arith.constant 0 : i32
    %c0_i32_0 = arith.constant 0 : i32
    %c0_i32_1 = arith.constant 0 : i32
    return %arg0, %c0_i32, %arg1, %c0_i32_0 : i32, i32, i32, i32
  }
  func.func @transform_2(%arg0: i32, %arg1: i32) -> (i32, i32, i32, i32) {
    %c0_i32 = arith.constant 0 : i32
    %c0_i32_0 = arith.constant 0 : i32
    %c0_i32_1 = arith.constant 0 : i32
    return %arg0, %c0_i32, %arg1, %c0_i32_0 : i32, i32, i32, i32
  }
}

</mosaic_0001>

<bundles_post_ra>
// kernel: tpu_custom_call.1
= control target key start
LH: loop header
LB: loop body
LE: loop exit
PB: predicated region body
PF: predicated region fallthrough
CT: control target
= control target key end

     0   :  { %7 = vsyncpa [#allocation5], 0  ;;  %s800_s0 = inlined_call_operand.hbm [shape: f32[2,8], index: 0, kind: input, shape index: {}]   ;;  %s801_s1 = inlined_call_operand.hbm [shape: f32[2,3,16,128], index: 1, kind: input, shape index: {}]   ;;  %s802_s2 = inlined_call_operand.hbm [shape: f32[2,2,16,128], index: 2, kind: output, shape index: {}]  }
   0x1   :  { %8 = vsyncpa [#allocation3], 0 }
   0x2   :  { %10 = vsyncpa [#allocation3 + $0x1], 0 }
   0x3   :  { %11 = vsyncpa [#allocation4], 0 }
   0x4   :  { %13 = vsyncpa [#allocation4 + $0x1], 0  ;;  %s619_s9 = smov 0   ;;  %s621_s10 = smov 0  }
   0x5   :  { %s623_s11 = smov 0   ;;  %s625_s12 = smov 0  }
   0x6   :  { %s627_s13 = smov 0   ;;  %s629_s14 = smov 0  }
   0x7 LB: > { %s370_s15 = sadd.s32 4294967295, %s595_s14   ;;  %s371_s16 = sadd.s32 4294967294, %s595_s14   ;;  %s595_s14 = sphi %s629_s14, %s19_s14   ;;  %s591_s13 = sphi %s627_s13, %s815_s13   ;;  %s587_s12 = sphi %s625_s12, %s814_s12   ;;  %s583_s11 = sphi %s623_s11, %s813_s11   ;;  %s579_s10 = sphi %s621_s10, %s812_s10   ;;  %s575_s9 = sphi %s619_s9, %s811_s9  }
   0x8   : > { %s61_s17 = sadd.s32 1, %s583_s11  ;;  %p68_p0 = scmp.ne.s32.totalorder %s583_s11, %s579_s10 }
   0x9   : > { %p69_p1 = scmp.eq.s32.totalorder %s595_s14, 0  ;;  %p74_p2 = scmp.ne.s32.totalorder %s579_s10, %s575_s9 }
   0xa   : > { %p657_p3 = scmp.eq.s32.totalorder %s370_s15, 0  ;;  %p100_p4 = scmp.eq.s32.totalorder %s370_s15, 1 }
   0xb   : > { %p70_p5 = por %p69_p1, %p68_p0  ;;  %p106_p6 = scmp.eq.s32.totalorder %s371_s16, 1 }
   0xc   : > { %p663_p7 = por %p657_p3, %p74_p2  ;;  %p667_p8 = por %p100_p4, %p68_p0 }
   0xd   : > { %p671_p9 = por %p106_p6, %p74_p2  ;;  %p372_p10 = scmp.ge.s32.totalorder %s595_s14, 1 }
   0xe   : > { %p113_p11 = scmp.lt.s32.totalorder %s595_s14, 3  ;;  %p416_p1 = scmp.lt.s32.totalorder %s595_s14, 2 }
   0xf   : > { %s806_s21 = scalar_select %p671_p9, 1, 0 }
  0x10   : > { %p678_p13 = pnand %p372_p10, %p113_p11  ;;  %s135_s23 = sand.u32 1, %s583_s11  }
  0x11   : > { %p686_p2 = pnand %p416_p1, %p70_p5  ;;  %s31_s25 = sadd.s32 1, %s591_s13 }
  0x12   : > { %p403_p0 = pneg %p678_p13  ;;  %s392_s26 = smul.u32 48, %s135_s23 }
  0x13   : > { %p33_p6 = scmp.ge.s32.totalorder %s31_s25, 2  ;;  %s597_s27 = smov [#allocation2]  }
  0x14   : > { %p404_p4 = pnand %p403_p0, %p657_p3  ;;  %s393_s30 = smul.u32 768, %s591_s13 }
  0x15   : > { %s817_s25 = smov (%p33_p6, %s31_s25), 0  ;;  %s139_s4 = scalar_lea.vmem [#allocation6], %s392_s26 }
  0x16   : > { %406 = dma.hbm_to_smem (!%p404_p4), %s800_s0, 32, %s597_s27, [#allocation5]  }
  0x17   : > { %s56_s3 = ssub.s32 %s591_s13, %s817_s25  ;;  %s148_s5 = sshll.u32 %s139_s4, 4  ;;  %s149_s5 = int_to_ptr.vmem [resolvable:$true] %s148_s5 }
  0x18   : > { %p59_p5 = scmp.eq.s32.totalorder %s56_s3, 0  ;;  %s147_s8 = scalar_lea.hbm %s801_s1, %s393_s30 }
  0x19   : > { %s136_s16 = scalar_lea.sflag [#allocation3], %s135_s23  ;;  %p485_p10 = pneg %p686_p2 }
  0x1a   : > { %s707_s15 = scalar_select %p59_p5, %s583_s11, %s61_s17  }
  0x1b   : > { %s496_s27 = scalar_lea.vmem %s149_s5, 768  ;;  %s598_s28 = smov [#allocation6]  }
  0x1c   : > { %p497_p11 = scmp.ne.s32.totalorder %s149_s5, %s496_s27  ;;  %s501_s29 = sshll.u32 %s598_s28, 4  ;;  %s502_s29 = int_to_ptr.vmem [resolvable:$false] %s501_s29 }
  0x1d   : > { %s503_s26 = scalar_lea.vmem %s502_s29, 1536  ;;  %p504_p4 = scmp.lt.s32.totalorder %s149_s5, %s502_s29 }
  0x1e   : > { %p499_p1 = pnand %p497_p11, %p485_p10  ;;  %p505_p6 = scmp.lt.s32.totalorder %s503_s26, %s496_s27 }
  0x20   : > { %p500_p0 = pneg %p499_p1  ;;  %p506_p12 = por %p505_p6, %p504_p4 }
  0x22   : > { %p507_p9 = pnand %p506_p12, %p500_p0 }
  0x24   : > { %510 = shalt.err (!%p507_p9)
}
  0x25   : > { %s599_s30 = smov 128   ;;  %s600_s17 = smov 8  }
  0x26   : > { %410 = dma.hbm_to_vmem [thread:$0]  (!%p686_p2), %s147_s8, 768, %s149_s5, %s136_s16, %s599_s30, %s599_s30, %s600_s17  }
  0x27   : > { %160 = sbr.rel (%p678_p13) target bundleno = 88 (0x58), region = 28 }
  0x2c   : > { %562 = dma.done.wait (%p657_p3), [#allocation5], 32  }
  0x2d   : > { %564 = vsyncadd (%p657_p3), [#allocation5], 4294967264  ;;  %s720_s23 = sand.u32 1, %s579_s10  }
  0x2e   : > { %s394_s3 = smul.u32 48, %s720_s23  ;;  %s167_s4 = scalar_lea.sflag [#allocation3], %s720_s23 }
  0x30   : > { %s170_s6 = scalar_lea.vmem [#allocation6], %s394_s3 }
  0x31   : > { %566 = dma.done.wait (%p663_p7), %s167_s4, 768  }
  0x32   : > { %568 = vsyncadd (%p663_p7), %s167_s4, 4294966528 }
  0x33   : > { %175 = sfence }
  0x34   : > { %s729_s22 = sshll.u32 %s587_s12, 7  ;;  %v194_v0 = vld [vmem:[%s170_s6] sm:$0xff]  ;;  %v195_v1 = vld [vmem:[%s170_s6 + $0x8] sm:$0xff]  ;;  %v379_v2 = vld [vmem:[%s170_s6 + $0x10] sm:$0xff]  ;;  %s378_s4 = sshll.u32 %s720_s23, 5 }
  0x35   : > { %s203_s18 = sld [smem:[#allocation2 + %s729_s22]]  ;;  %s204_s24 = sadd.s32 1, %s729_s22  ;;  %v380_v4 = vld [vmem:[%s170_s6 + $0x18] sm:$0xff]  ;;  %v381_v5 = vld [vmem:[%s170_s6 + $0x20] sm:$0xff]  ;;  %v382_v7 = vld [vmem:[%s170_s6 + $0x28] sm:$0xff] }
  0x36   : > { %s206_s5 = sadd.s32 2, %s729_s22  ;;  %s205_s7 = sld [smem:[#allocation2 + %s204_s24]] }
  0x37   : > { %s214_s8 = sadd.s32 6, %s729_s22  ;;  %s207_s16 = sld [smem:[#allocation2 + %s206_s5]] }
  0x38   : > { %s735_s19 = sld [smem:[#allocation2 + %s214_s8]]  ;;  %s208_s27 = sadd.s32 3, %s729_s22 }
  0x39   : > { %s210_s28 = sadd.s32 4, %s729_s22  ;;  %s209_s29 = sld [smem:[#allocation2 + %s208_s27]] }
  0x3a   : > { %s212_s26 = sadd.s32 5, %s729_s22  ;;  %s211_s30 = sld [smem:[#allocation2 + %s210_s28]] }
  0x3b   : > { %v218_v3 = vstv %s203_s18  ;;  %s216_s17 = sadd.s32 7, %s729_s22  ;;  %s213_s3 = sld [smem:[#allocation2 + %s212_s26]] }
  0x3c   : > { %v219_v6 = vmul.f32 %v218_v3, %v194_v0  ;;  %v220_v8 = vmul.f32 %v218_v3, %v195_v1  ;;  %v221_v9 = vstv %s205_s7  ;;  %s742_s24 = sld [smem:[#allocation2 + %s216_s17]]  ;;  %s191_s6 = scalar_lea.vmem [#allocation7], %s378_s4 }
  0x3d   : > { %v222_v10 = vmul.f32 %v379_v2, %v221_v9  ;;  %v226_v11 = vstv %s207_s16  ;;  %v223_v12 = vmul.f32 %v380_v4, %v221_v9  ;;  %s271_s22 = sshll.u32 %s191_s6, 4  ;;  %s391_s18 = sshll.u32 %s587_s12, 9  ;;  %s747_s22 = int_to_ptr.vmem [resolvable:$true] %s271_s22 }
  0x3e   : > { %v227_v13 = vmul.f32 %v381_v5, %v226_v11  ;;  %v228_v14 = vmul.f32 %v382_v7, %v226_v11  ;;  %v231_v17 = vstv %s735_s19  ;;  %s752_s8 = scalar_lea.hbm %s802_s2, %s391_s18  ;;  %s256_s12 = scalar_lea.sflag [#allocation4], %s720_s23 }
  0x3f   : > { %v224_v15 = vadd.f32 %v222_v10, %v219_v6  ;;  %v225_v16 = vadd.f32 %v223_v12, %v220_v8  ;;  %v236_v18 = vstv %s209_s29  ;;  %s511_s16 = scalar_lea.vmem %s747_s22, 512  ;;  %s601_s19 = smov [#allocation7]  }
  0x40   : > { %v237_v21 = vmul.f32 %v236_v18, %v194_v0  ;;  %v239_v22 = vstv %s211_s30  ;;  %v238_v25 = vmul.f32 %v236_v18, %v195_v1  ;;  %p512_p3 = scmp.ne.s32.totalorder %s747_s22, %s511_s16  ;;  %s515_s27 = sshll.u32 %s601_s19, 4  ;;  %s516_s27 = int_to_ptr.vmem [resolvable:$false] %s515_s27 }
  0x41   : > { %v229_v19 = vadd.f32 %v227_v13, %v224_v15  ;;  %v230_v20 = vadd.f32 %v228_v14, %v225_v16  ;;  %v240_v23 = vmul.f32 %v379_v2, %v239_v22  ;;  %v244_v24 = vstv %s213_s3  ;;  %s517_s28 = scalar_lea.vmem %s516_s27, 1024  ;;  %p518_p12 = scmp.lt.s32.totalorder %s747_s22, %s516_s27 }
  0x42   : > { %v241_v26 = vmul.f32 %v380_v4, %v239_v22  ;;  %v245_v29 = vmul.f32 %v381_v5, %v244_v24  ;;  %v246_v32 = vmul.f32 %v382_v7, %v244_v24  ;;  %v249_v33 = vstv %s742_s24  ;;  %p513_p7 = pnand %p512_p3, %p667_p8  ;;  %p519_p13 = scmp.lt.s32.totalorder %s517_s28, %s511_s16 }
  0x43   : > { %v232_v27 = vadd.f32 %v231_v17, %v229_v19  ;;  %v233_v28 = vadd.f32 %v231_v17, %v230_v20  ;;  %v242_v30 = vadd.f32 %v240_v23, %v237_v21 }
  0x44   : > { %v243_v31 = vadd.f32 %v241_v26, %v238_v25  ;;  %p514_p9 = pneg %p513_p7  ;;  %p520_p2 = por %p519_p13, %p518_p12 }
  0x45   : > { %234 = vst [vmem:[%s191_s6] sm:$0xff] %v232_v27  ;;  %235 = vst [vmem:[%s191_s6 + $0x8] sm:$0xff] %v233_v28  ;;  %v247_v34 = vadd.f32 %v245_v29, %v242_v30 }
  0x46   : > { %v248_v35 = vadd.f32 %v246_v32, %v243_v31  ;;  %p521_p5 = pnand %p520_p2, %p514_p9 }
  0x47   : > { %v250_v36 = vadd.f32 %v249_v33, %v247_v34 }
  0x48   : > { %v251_v37 = vadd.f32 %v249_v33, %v248_v35 }
  0x49   : > { %384 = vst [vmem:[%s191_s6 + $0x10] sm:$0xff] %v250_v36 }
  0x4a   : > { %385 = vst [vmem:[%s191_s6 + $0x18] sm:$0xff] %v251_v37 }
  0x4b   : > { %524 = shalt.err (!%p521_p5)
}
  0x4c   : > { %s525_s29 = scalar_lea.hbm %s752_s8, 512  ;;  %s529_s17 = scalar_lea.hbm %s802_s2, 1024 }
  0x4d   : > { %p526_p10 = scmp.ne.s32.totalorder %s752_s8, %s525_s29  ;;  %p530_p0 = scmp.lt.s32.totalorder %s752_s8, %s802_s2 }
  0x4e   : > { %p531_p4 = scmp.lt.s32.totalorder %s529_s17, %s525_s29 }
  0x4f   : > { %p527_p11 = pnand %p526_p10, %p667_p8 }
  0x50   : > { %p532_p6 = por %p531_p4, %p530_p0 }
  0x51   : > { %p528_p1 = pneg %p527_p11 }
  0x53   : > { %p533_p3 = pnand %p532_p6, %p528_p1 }
  0x55   : > { %536 = shalt.err (!%p533_p3)
}
  0x56   : > { %s602_s24 = smov 128   ;;  %s603_s6 = smov 8  }
  0x57   : > { %401 = dma.vmem_to_hbm [thread:$0]  (%p667_p8), %s747_s22, 512, %s752_s8, %s256_s12, %s602_s24, %s602_s24, %s603_s6  }
  0x58 PF: > { %s286_s18 = sand.u32 1, %s575_s9   ;;  %p809_p7 = scmp.ne.s32.totalorder %s806_s21, 0 }
  0x59   : > { %p810_p9 = scmp.ge.s32.totalorder %s595_s14, 2  ;;  %s287_s5 = scalar_lea.sflag [#allocation4], %s286_s18 }
  0x5b   : > { %p412_p12 = pnand %p810_p9, %p809_p7 }
  0x5d   : > { %p413_p13 = pneg %p412_p12 }
  0x5f   : > { %570 = dma.done.wait (%p413_p13), %s287_s5, 512  }
  0x60   : > { %572 = vsyncadd (%p413_p13), %s287_s5, 4294966784  ;;  %s19_s14 = sadd.s32 1, %s595_s14   ;;  %s811_s9 = smov %s579_s10 }
  0x61   : > { %p16_p2 = scmp.ge.s32.totalorder %s19_s14, 4   ;;  %s812_s10 = smov %s583_s11 }
  0x62   : > { %s813_s11 = smov %s707_s15  ;;  %s814_s12 = smov %s591_s13 }
  0x63   : > { %s815_s13 = smov %s817_s25  ;;  %18 = sbr.rel (!%p16_p2) target bundleno = 7 (0x7), region = 81 }
  0x68   :  { %292 = vsyncpa [#allocation3], 1 }
  0x69   :  { %294 = vsyncpa [#allocation3 + $0x1], 1 }
  0x6a   :  { %295 = vsyncpa [#allocation4], 1 }
  0x6b   :  { %297 = vsyncpa [#allocation4 + $0x1], 1 }
  0x6c   :  { %298 = vsyncpa [#allocation5], 1 }
  0x6d   :  { %300 = vsyncpa [#allocation5 + $0x1], 1 }

</bundles_post_ra>
